<compile_context>
chip_gen: v5e
topology: v5e:2x2
jax: 0.10.0
libtpu: 0.0.40
codegen_flags: <defaults>
</compile_context>

<pallas_src>
import functools

import jax
import jax.numpy as jnp
from jax.experimental import pallas as pl
from jax.experimental.pallas import tpu as pltpu


# ---------------------------------------------------------------------------
# Kernel body
# ---------------------------------------------------------------------------
def _interlace_kernel(x_ref, o_ref, *, sf):
    """x_ref: (r_out_tile*sf, t_tile)  ->  o_ref: (r_out_tile, t_tile*sf).

    Input row r*sf + s supplies output element [r, t*sf + s].  The relayout is
    a sublane regroup + lane interleave (XLU); the final store is lane dense
    because t_tile*sf is a multiple of 128 whenever t_tile is.
    """
    x = x_ref[...]
    r_in, t = x.shape
    r_out = r_in // sf
    x = x.reshape(r_out, sf, t)
    x = jnp.swapaxes(x, 1, 2)                    # (r_out, t, sf) -- XLU relayout
    o_ref[...] = x.reshape(r_out, t * sf)        # lane-dense (128-multiple) store
    # TODO(synk): bf16/int8 + power-of-two sf fast path that packs each sf-row
    # group into 32-bit words via pltpu.bitcast so the lane interleave becomes
    # a plain 32-bit copy / VPU shift+or instead of an XLU transpose.


# ---------------------------------------------------------------------------
# Tile / VMEM planning
# ---------------------------------------------------------------------------
def _cdiv(a, b):
    return -(-a // b)


def _largest_multiple_divisor(n, unit, cap):
    """Largest multiple of `unit` that divides `n` and is <= cap (0 if none)."""
    best, d = 0, unit
    cap = min(cap, n)
    while d <= cap:
        if n % d == 0:
            best = d
        d += unit
    return best


def _vmem_plan():
    """Returns (per-step tile budget, scoped vmem_limit_bytes), per generation."""
    try:
        phys = pltpu.get_tpu_info().vmem_capacity_bytes
    except Exception:
        phys = 64 * 1024 * 1024          # conservative if the query is unavailable
    if phys >= 96 * 1024 * 1024:         # v5e / v6e class: 128 MiB per core
        return 32 * 1024 * 1024, 64 * 1024 * 1024
    return 14 * 1024 * 1024, 36 * 1024 * 1024   # v7x class: 64 MiB per core


def _choose_tiles(r_out, sf, t, itemsize, tile_budget, min_steps=4):
    """Pick (r_out_tile, t_tile).

    Input tile = (r_out_tile*sf, t_tile), output tile = (r_out_tile, t_tile*sf)
    (same byte size).  Per-step VMEM footprint is budgeted at ~6x one tile:
    double-buffered input + double-buffered output + the materialized relayout
    intermediate.
    """
    sub = max(8, 32 // itemsize)         # sublane granule: f32->8, bf16->16, i8->32
    s_target = max(tile_budget // 6, sub * 128 * itemsize)

    rows_tileable = r_out > sub
    r_min = sub if rows_tileable else r_out

    # --- T tile: lane-dense multiple of 128 (or the full, small trailing dim).
    if t < 128:
        t_tile = t
    else:
        cap = max(128, (s_target // max(1, r_min * sf * itemsize)) // 128 * 128)
        cap = min(cap, (t // 128) * 128)
        if t % 128 == 0:
            t_tile = _largest_multiple_divisor(t, 128, cap) or 128
        else:
            t_tile = cap                 # cdiv grid; Pallas masks the tail block

    # --- Row tile: multiple of the sublane granule (or full rows).
    if not rows_tileable:
        r_out_tile = r_out
    else:
        cap = max(sub, (s_target // max(1, sf * t_tile * itemsize)) // sub * sub)
        cap = min(cap, (r_out // sub) * sub)
        if r_out % sub == 0:
            r_out_tile = _largest_multiple_divisor(r_out, sub, cap) or sub
        else:
            r_out_tile = cap             # cdiv grid; Pallas masks the tail block

    # --- Keep a few grid steps so the DMA pipeline overlaps and v7x's second
    #     TensorCore has parallel work (when the problem is big enough).
    def steps(rt, tt):
        return _cdiv(r_out, rt) * _cdiv(t, tt)

    while steps(r_out_tile, t_tile) < min_steps and t >= 128 and t_tile > 128:
        cap = max(128, (t_tile // 2) // 128 * 128)
        nxt = (_largest_multiple_divisor(t, 128, cap) or 128) if t % 128 == 0 else cap
        if nxt >= t_tile:
            break
        t_tile = nxt
    while steps(r_out_tile, t_tile) < min_steps and rows_tileable and r_out_tile > sub:
        cap = max(sub, (r_out_tile // 2) // sub * sub)
        nxt = (_largest_multiple_divisor(r_out, sub, cap) or sub) if r_out % sub == 0 else cap
        if nxt >= r_out_tile:
            break
        r_out_tile = nxt

    return r_out_tile, t_tile


# ---------------------------------------------------------------------------
# Public wrapper (matches Interacing1D.forward)
# ---------------------------------------------------------------------------
def interacing1d_forward(data, scale_factor):
    """data: [B, C*sf, T] -> [B, C, T*sf];  out[b,c,t*sf+s] = in[b,c*sf+s,t]."""
    sf = int(scale_factor)
    if sf == 1:
        return data
    b, c_in, t = data.shape
    if c_in % sf != 0:
        raise ValueError("channel dimension must be divisible by scale_factor")
    c_out = c_in // sf
    r_out = b * c_out
    r_in = b * c_in

    itemsize = jnp.dtype(data.dtype).itemsize
    tile_budget, vmem_limit = _vmem_plan()
    r_out_tile, t_tile = _choose_tiles(r_out, sf, t, itemsize, tile_budget)
    r_in_tile = r_out_tile * sf

    # Fold the batch dim into the row/sublane dim (free, contiguous reshape):
    # output row r = b*C + c is fed by input rows r*sf .. r*sf + sf - 1.
    x2d = data.reshape(r_in, t)

    grid = (_cdiv(r_out, r_out_tile), _cdiv(t, t_tile))

    out2d = pl.pallas_call(
        functools.partial(_interlace_kernel, sf=sf),
        out_shape=jax.ShapeDtypeStruct((r_out, t * sf), data.dtype),
        grid_spec=pltpu.PrefetchScalarGridSpec(
            num_scalar_prefetch=0,
            grid=grid,
            in_specs=[pl.BlockSpec((r_in_tile, t_tile), lambda ri, ti: (ri, ti))],
            out_specs=pl.BlockSpec((r_out_tile, t_tile * sf), lambda ri, ti: (ri, ti)),
        ),
        compiler_params=pltpu.CompilerParams(
            dimension_semantics=("parallel", "parallel"),
            vmem_limit_bytes=vmem_limit,
        ),
    )(x2d)

    return out2d.reshape(b, c_out, t * sf)


# ---------------------------------------------------------------------------
# Pure-JAX reference (mirrors the PyTorch module exactly)
# ---------------------------------------------------------------------------
def _reference_forward(data, sf):
    if sf == 1:
        return data
    b, c_in, t = data.shape
    r = data.reshape(b, c_in // sf, sf, t)
    r = jnp.swapaxes(r, 2, 3)
    return r.reshape(b, c_in // sf, t * sf)


if __name__ == "__main__":
    key = jax.random.PRNGKey(0)
    k1, k2, k3 = jax.random.split(key, 3)

    # Case 1: docstring-sized shapes; single full-row / full-T tile,
    # 128-lane output store.
    B, C, SF, T = 2, 4, 4, 32                       # input channels = C*SF = 16
    x1 = jax.random.normal(k1, (B, C * SF, T), dtype=jnp.float32)
    o1 = jax.block_until_ready(interacing1d_forward(x1, SF))
    assert o1.shape == (B, C, T * SF) and o1.dtype == x1.dtype
    assert jnp.array_equal(o1, _reference_forward(x1, SF)), "case 1 mismatch"

    # Case 2: multi-step grid (batch folded into rows, T tiled to 128).
    B2, C2, SF2, T2 = 2, 8, 2, 256                  # input channels = 16
    x2 = jax.random.normal(k2, (B2, C2 * SF2, T2), dtype=jnp.float32)
    o2 = jax.block_until_ready(interacing1d_forward(x2, SF2))
    assert o2.shape == (B2, C2, T2 * SF2)
    assert jnp.array_equal(o2, _reference_forward(x2, SF2)), "case 2 mismatch"

    # Case 3: bf16, non-128-aligned T -> cdiv grid with a masked tail block.
    B3, C3, SF3, T3 = 3, 5, 2, 200                  # input channels = 10
    x3 = jax.random.normal(k3, (B3, C3 * SF3, T3)).astype(jnp.bfloat16)
    o3 = jax.block_until_ready(interacing1d_forward(x3, SF3))
    assert o3.shape == (B3, C3, T3 * SF3) and o3.dtype == jnp.bfloat16
    assert jnp.array_equal(o3, _reference_forward(x3, SF3)), "case 3 mismatch"

    print("KERNEL_OK")
</pallas_src>

<mosaic_0001>
module attributes {stable_mosaic.version = 11 : i64} {
  func.func @_interlace_kernel(%arg0: i32, %arg1: i32, %arg2: memref<32x32xf32, #tpu.memory_space<vmem>>, %arg3: memref<8x128xf32, #tpu.memory_space<vmem>>) attributes {dimension_semantics = [#tpu.dimension_semantics<parallel>, #tpu.dimension_semantics<parallel>], iteration_bounds = array<i64: 1, 1>, scalar_prefetch = 0 : i64, scratch_operands = 0 : i64, tpu.core_type = #tpu.core_type<tc>, window_params = [{transform_indices = @transform_0, window_bounds = array<i64: 32, 32>}, {transform_indices = @transform_1, window_bounds = array<i64: 8, 128>}]} {
    %c0 = arith.constant 0 : index
    %c0_0 = arith.constant 0 : index
    %0 = vector.load %arg2[%c0, %c0_0] : memref<32x32xf32, #tpu.memory_space<vmem>>, vector<32x32xf32>
    %1 = vector.shape_cast %0 : vector<32x32xf32> to vector<8x4x32xf32>
    %2 = tpu.transpose %1, [0, 2, 1] : vector<8x4x32xf32> -> vector<8x32x4xf32>
    %3 = vector.shape_cast %2 : vector<8x32x4xf32> to vector<8x128xf32>
    %c0_1 = arith.constant 0 : index
    %c0_2 = arith.constant 0 : index
    %4 = vector.load %arg3[%c0_1, %c0_2] : memref<8x128xf32, #tpu.memory_space<vmem>>, vector<8x128xf32>
    tpu.vector_store %arg3[%c0_1, %c0_2], %3 {strides = array<i32>} : memref<8x128xf32, #tpu.memory_space<vmem>>, vector<8x128xf32>,
    return
  }
  func.func @transform_0(%arg0: i32, %arg1: i32) -> (i32, i32) {
    %c0_i32 = arith.constant 0 : i32
    return %arg0, %arg1 : i32, i32
  }
  func.func @transform_1(%arg0: i32, %arg1: i32) -> (i32, i32) {
    %c0_i32 = arith.constant 0 : i32
    return %arg0, %arg1 : i32, i32
  }
}

</mosaic_0001>

<bundles_post_ra>
// kernel: tpu_custom_call.1
= control target key start
LH: loop header
LB: loop body
LE: loop exit
PB: predicated region body
PF: predicated region fallthrough
CT: control target
= control target key end

     0   :  { %6 = vsyncpa [#allocation3], 0  ;;  %s1473_s0 = inlined_call_operand.hbm [shape: f32[32,32], index: 0, kind: input, shape index: {}]   ;;  %s1474_s1 = inlined_call_operand.hbm [shape: f32[8,128], index: 1, kind: output, shape index: {}]  }
   0x1   :  { %7 = vsyncpa [#allocation4], 0  ;;  %s12_s8 = sshll.u32 %s1473_s0, 4  ;;  %s1039_s9 = smov [#allocation2]   ;;  %s13_s8 = int_to_ptr.hbm [resolvable:$true] %s12_s8 }
   0x2   :  { %s14_s10 = sshll.u32 %s1039_s9, 4  ;;  %s1040_s11 = smov 128   ;;  %s15_s10 = int_to_ptr.vmem [resolvable:$true] %s14_s10 }
   0x3   :  { %s1041_s12 = smov 8  }
   0x4   :  { %20 = dma.hbm_to_vmem [thread:$0]  %s13_s8, 512, %s15_s10, [#allocation3], %s1040_s11, %s1040_s11, %s1041_s12  }
   0x5   :  { %1035 = dma.done.wait [#allocation3], 512  }
   0x6   :  { %1036 = vsyncadd [#allocation3], 4294966784  ;;  %v26_v0 = vld [vmem:[#allocation2 + $0x8] sm:$0xff]  ;;  %v25_v1 = vld [vmem:[#allocation2] sm:$0xff]  ;;  %vm298_vm0 = vcmask 1047556   ;;  %s1044_s0 = smov 12  }
   0x7   :  { %105 = vxpose.xlu1.b32.start.end [1/1] (short) (narrow) %v26_v0, 32  ;;  %41 = vxpose.xlu0.b32.start.end [1/1] (short) (narrow) %v25_v1, 32  ;;  %v27_v2 = vld [vmem:[#allocation2 + $0x10] sm:$0xff]  ;;  %v34_v3 = vrot.slane %v26_v0, 4  ;;  %v33_v4 = vrot.slane %v25_v1, 4  ;;  %v28_v6 = vld [vmem:[#allocation2 + $0x18] sm:$0xff] }
   0x8   :  { %169 = vxpose.xlu2.b32.start.end [1/1] (short) (narrow) %v27_v2, 32  ;;  %v35_v5 = vrot.slane %v27_v2, 4  ;;  %v36_v7 = vrot.slane %v28_v6, 4  ;;  %v1042_v40 = vmov 1983009808   ;;  %s1045_s13 = smov 4  }
   0x9   :  { %v303_v41 = vunpack.c.l.s4 %v1042_v40  ;;  %v1043_v56 = vmov 1934713408   ;;  %s1046_s14 = smov 28   ;;  %s1047_s15 = smov 16   ;;  %vm870_vm1 = vcmask 31744   ;;  %vm872_vm2 = vcmask 64512  }
   0xa   :  { %v351_v57 = vunpack.c.l.s4 %v1043_v56  ;;  %s1048_s16 = smov 48   ;;  %s1049_s17 = smov 20   ;;  %vm874_vm3 = vcmask 97280   ;;  %vm876_vm4 = vcmask 130048   ;;  %vm878_vm5 = vcmask 162816  }
   0xb   :  { %v1116_v45 = vunpack.c.0.s8 %v303_v41  ;;  %s1050_s18 = smov 36   ;;  %s1051_s19 = smov 60   ;;  %vm880_vm6 = vcmask 195584   ;;  %vm882_vm7 = vcmask 228352   ;;  %vm884_vm8 = vcmask 261120  }
   0xc   :  { %s1052_s20 = smov 24   ;;  %s1053_s21 = smov 44   ;;  %vm886_vm9 = vcmask 293888   ;;  %vm888_vm10 = vcmask 326656   ;;  %vm890_vm11 = vcmask 359424   ;;  %vm892_vm12 = vcmask 392192  }
   0xd   :  { %s1054_s22 = smov 72   ;;  %s1055_s23 = smov 56   ;;  %vm894_vm13 = vcmask 424960   ;;  %vm896_vm14 = vcmask 457728   ;;  %vm898_vm15 = vcmask 490496  }
   0xe   :  { %s1056_s24 = smov 32   ;;  %s1057_s25 = smov 84  }
   0xf   :  { %s1058_s26 = smov 40   ;;  %s1059_s27 = smov 68  }
  0x10   :  { %s1060_s28 = smov 96   ;;  %s1061_s29 = smov 52  }
  0x11   :  { %s1062_s30 = smov 80   ;;  %s1063_s2 = smov 108  }
  0x12   :  { %s1064_s3 = smov 92   ;;  %s1065_s4 = smov 64  }
  0x13   :  { %s1066_s5 = smov 120   ;;  %s1067_s6 = smov 76  }
  0x14   :  { %s1068_s7 = smov 104   ;;  %s1069_s8 = smov 88  }
  0x15   :  { %s1070_s9 = smov 116   ;;  %s1071_s10 = smov 100  }
  0x16   :  { %s1072_s11 = smov 112  }
  0x27   :  { %137 = vxpose.xlu1.b32.start.end [1/1] (short) (narrow) %v34_v3, 32  ;;  %73 = vxpose.xlu0.b32.start.end [1/1] (short) (narrow) %v33_v4, 32 }
  0x28   :  { %201 = vxpose.xlu2.b32.start.end [1/1] (short) (narrow) %v35_v5, 32 }
  0x47   :  { %265 = vxpose.xlu1.b32.start.end [1/1] (short) (narrow) %v36_v7, 32  ;;  %233 = vxpose.xlu0.b32.start.end [1/1] (short) (narrow) %v28_v6, 32  ;;  %v1144_v7 = vunpack.c.0.s8 %v351_v57 }
  0xa1   :  { %v1094_v18 = vpop.trf.xlu2 }
  0xa2   :  { %v324_v1 = vrot.slane %v1094_v18, 4 }
  0xa9   :  { %v1102_v25 = vpop.trf.xlu2 }
  0xaa   :  { %v436_v6 = vrot.slane %v1102_v25, 4 }
  0xab   :  { %v121_v8 = vpop.trf.xlu1  ;;  %v57_v9 = vpop.trf.xlu0 }
  0xac   :  { %v300_v10 = vrot.slane %v57_v9, 4  ;;  %v297_v43 = vrot.slane %v121_v8, 4 }
  0xae   :  { %v301_v11 = vsel %vm298_vm0, %v121_v8, %v300_v10  ;;  %v299_v46 = vsel %vm298_vm0, %v297_v43, %v57_v9 }
  0xaf   :  { %v305_v53 = vperm.slane %v299_v46, %v1116_v45  ;;  %v1128_v54 = vperm.slane %v301_v11, %v1116_v45 }
  0xb1   :  { %v1108_v32 = vpop.trf.xlu2  ;;  %v348_v4 = vrot.slane %v305_v53, 4  ;;  %v360_v5 = vrot.slane %v1128_v54, 4 }
  0xb3   :  { %v122_v12 = vpop.trf.xlu1  ;;  %v58_v13 = vpop.trf.xlu0 }
  0xb4   :  { %v410_v14 = vrot.slane %v122_v12, 4  ;;  %v412_v15 = vrot.slane %v58_v13, 4 }
  0xb6   :  { %v411_v16 = vsel %vm298_vm0, %v410_v14, %v58_v13  ;;  %v1092_v17 = vsel %vm298_vm0, %v122_v12, %v412_v15 }
  0xb7   :  { %v1136_v0 = vperm.slane %v411_v16, %v1116_v45 }
  0xb9   :  { %v1110_v37 = vpop.trf.xlu2 }
  0xbb   :  { %v123_v19 = vpop.trf.xlu1  ;;  %v59_v20 = vpop.trf.xlu0 }
  0xbc   :  { %v522_v21 = vrot.slane %v123_v19, 4  ;;  %v524_v22 = vrot.slane %v59_v20, 4 }
  0xbe   :  { %v1097_v23 = vsel %vm298_vm0, %v522_v21, %v59_v20  ;;  %v1100_v24 = vsel %vm298_vm0, %v123_v19, %v524_v22  ;;  %v1151_v20 = vperm.slane %v1092_v17, %v1116_v45  ;;  %v460_v21 = vrot.slane %v1136_v0, 4 }
  0xc1   :  { %v217_v42 = vpop.trf.xlu2 }
  0xc2   :  { %v336_v62 = vrot.slane %v217_v42, 4 }
  0xc3   :  { %v124_v26 = vpop.trf.xlu1  ;;  %v60_v27 = vpop.trf.xlu0 }
  0xc4   :  { %v634_v28 = vrot.slane %v124_v26, 4  ;;  %v636_v29 = vrot.slane %v60_v27, 4 }
  0xc6   :  { %v1105_v30 = vsel %vm298_vm0, %v634_v28, %v60_v27  ;;  %v637_v31 = vsel %vm298_vm0, %v124_v26, %v636_v29 }
  0xc7   :  { %v645_v47 = vperm.slane %v637_v31, %v1116_v45 }
  0xc9   :  { %v696_v58 = vrot.slane %v645_v47, 4  ;;  %v218_v63 = vpop.trf.xlu2 }
  0xcb   :  { %v153_v33 = vpop.trf.xlu1  ;;  %v89_v34 = vpop.trf.xlu0 }
  0xcc   :  { %v310_v44 = vrot.slane %v153_v33, 4  ;;  %v312_v51 = vrot.slane %v89_v34, 4 }
  0xce   :  { %v311_v50 = vsel %vm298_vm0, %v310_v44, %v89_v34  ;;  %v313_v61 = vsel %vm298_vm0, %v153_v33, %v312_v51  ;;  %v448_v44 = vrot.slane %v218_v63, 4 }
  0xcf   :  { %v317_v59 = vperm.slane %v311_v50, %v1116_v45  ;;  %v321_v8 = vperm.slane %v313_v61, %v1116_v45 }
  0xd1   :  { %v346_v9 = vrot.slane %v317_v59, 4  ;;  %v349_v22 = vsel %vm298_vm0, %v317_v59, %v348_v4  ;;  %v361_v40 = vsel %vm298_vm0, %v321_v8, %v360_v5  ;;  %v358_v51 = vrot.slane %v321_v8, 4 }
  0xd3   :  { %v154_v35 = vpop.trf.xlu1  ;;  %v90_v36 = vpop.trf.xlu0  ;;  %v347_v34 = vsel %vm298_vm0, %v346_v9, %v305_v53 }
  0xd4   :  { %v422_v10 = vrot.slane %v154_v35, 4  ;;  %v424_v14 = vrot.slane %v90_v36, 4  ;;  %v1176_v53 = vperm.slane %v347_v34, %v1144_v7 }
  0xd6   :  { %v423_v41 = vsel %vm298_vm0, %v422_v10, %v90_v36 }
  0xd7   :  { %v1184_v36 = vperm.slane %v423_v41, %v1116_v45  ;;  %v1228_v41 = vperm.slane %v1100_v24, %v1116_v45 }
  0xdb   :  { %v1112_v38 = vpop.trf.xlu1  ;;  %v1114_v39 = vpop.trf.xlu0 }
  0xe3   :  { %v1120_v48 = vpop.trf.xlu1  ;;  %v1122_v49 = vpop.trf.xlu0 }
  0xe4   :  { %v648_v52 = vrot.slane %v1122_v49, 4 }
  0xe6   :  { %v649_v55 = vsel %vm298_vm0, %v1120_v48, %v648_v52  ;;  %v357_v52 = vperm.slane %v349_v22, %v1144_v7 }
  0xe7   :  { %v657_v60 = vperm.slane %v649_v55, %v1116_v45  ;;  %v1178_v55 = vpop.trf.xlu2 }
  0xe8   :  { %v400_v10 = vrot.slane %v357_v52, 4 }
  0xe9   :  { %v694_v2 = vrot.slane %v657_v60, 4  ;;  %v1140_v3 = vsel %vm298_vm0, %v657_v60, %v696_v58 }
  0xeb   :  { %v281_v11 = vpop.trf.xlu1  ;;  %v249_v12 = vpop.trf.xlu0  ;;  %v695_v13 = vsel %vm298_vm0, %v694_v2, %v645_v47 }
  0xec   :  { %v334_v15 = vrot.slane %v281_v11, 4  ;;  %v337_v16 = vsel %vm298_vm0, %v281_v11, %v336_v62  ;;  %v322_v19 = vrot.slane %v249_v12, 4  ;;  %v325_v29 = vsel %vm298_vm0, %v249_v12, %v324_v1 }
  0xed   :  { %v345_v26 = vperm.slane %v337_v16, %v1116_v45  ;;  %v1161_v31 = vperm.slane %v695_v13, %v1144_v7  ;;  %v333_v47 = vperm.slane %v325_v29, %v1116_v45  ;;  %v396_v11 = vrot.slane %v1176_v53, 4 }
  0xee   :  { %v335_v27 = vsel %vm298_vm0, %v334_v15, %v217_v42  ;;  %v323_v28 = vsel %vm298_vm0, %v322_v19, %v1094_v18  ;;  %v425_v42 = vsel %vm298_vm0, %v154_v35, %v424_v14  ;;  %v1171_v18 = vperm.slane %v1097_v23, %v1116_v45 }
  0xef   :  { %v341_v33 = vperm.slane %v335_v27, %v1116_v45  ;;  %v329_v17 = vperm.slane %v323_v28, %v1116_v45  ;;  %v382_v43 = vrot.slane %v345_v26, 4  ;;  %v1181_v35 = vperm.slane %v361_v40, %v1144_v7 }
  0xf0   :  { %v433_v23 = vperm.slane %v425_v42, %v1116_v45  ;;  %v384_v2 = vrot.slane %v333_v47, 4  ;;  %v359_v12 = vsel %vm298_vm0, %v358_v51, %v1128_v54  ;;  %v458_v13 = vrot.slane %v1184_v36, 4 }
  0xf1   :  { %v370_v46 = vrot.slane %v341_v33, 4  ;;  %v372_v50 = vrot.slane %v329_v17, 4  ;;  %v383_v60 = vsel %vm298_vm0, %v382_v43, %v333_v47  ;;  %v572_v42 = vrot.slane %v1171_v18, 4 }
  0xf2   :  { %v1209_v15 = vperm.slane %v383_v60, %v1144_v7  ;;  %v470_v27 = vrot.slane %v433_v23, 4  ;;  %v385_v29 = vsel %vm298_vm0, %v345_v26, %v384_v2  ;;  %v408_v26 = vrot.slane %v1181_v35, 4 }
  0xf3   :  { %v282_v56 = vpop.trf.xlu1  ;;  %v250_v57 = vpop.trf.xlu0  ;;  %v373_v58 = vsel %vm298_vm0, %v341_v33, %v372_v50  ;;  %v371_v59 = vsel %vm298_vm0, %v370_v46, %v329_v17  ;;  %v472_v33 = vrot.slane %v1151_v20, 4  ;;  %v548_v17 = vrot.slane %v1108_v32, 4 }
  0xf4   :  { %v446_v61 = vrot.slane %v282_v56, 4  ;;  %v449_v62 = vsel %vm298_vm0, %v282_v56, %v448_v44  ;;  %v437_v1 = vsel %vm298_vm0, %v250_v57, %v436_v6  ;;  %v381_v5 = vperm.slane %v373_v58, %v1144_v7  ;;  %v1244_v56 = vpop.trf.xlu2 }
  0xf5   :  { %v1193_v4 = vperm.slane %v449_v62, %v1116_v45  ;;  %v1197_v8 = vperm.slane %v371_v59, %v1144_v7  ;;  %v1206_v14 = vperm.slane %v437_v1, %v1116_v45  ;;  %v434_v16 = vrot.slane %v250_v57, 4 }
  0xf6   :  { %v447_v9 = vsel %vm298_vm0, %v446_v61, %v218_v63  ;;  %v401_v19 = vsel %vm298_vm0, %v381_v5, %v400_v10  ;;  %v398_v22 = vrot.slane %v381_v5, 4  ;;  %v365_v46 = vperm.slane %v359_v12, %v1144_v7 }
  0xf7   :  { %v494_v6 = vrot.slane %v1193_v4, 4  ;;  %v397_v63 = vsel %vm298_vm0, %v1197_v8, %v396_v11  ;;  %v1215_v54 = vperm.slane %v447_v9, %v1116_v45  ;;  %755 = vrot.lane.b32.xlu1 %v401_v19, %s1044_s0  ;;  %v435_v47 = vsel %vm298_vm0, %v434_v16, %v1102_v25  ;;  %s1074_s0 = smov [#allocation5]  }
  0xf8   :  { %747 = vrot.lane.b32.xlu2 %v397_v63, %s1045_s13  ;;  %v399_v34 = vsel %vm298_vm0, %v398_v22, %v357_v52  ;;  %v1240_v51 = vperm.slane %v385_v29, %v1144_v7  ;;  %v402_v24 = vrot.slane %v1209_v15, 4  ;;  %v471_v57 = vsel %vm298_vm0, %v470_v27, %v1151_v20  ;;  %s938_s13 = sshll.u32 %s1074_s0, 4  ;;  %s939_s13 = int_to_ptr.vmem [resolvable:$true] %s938_s13 }
  0xf9   :  { %v495_v28 = vsel %vm298_vm0, %v494_v6, %v1206_v14  ;;  %751 = vrot.lane.b32.xlu0 %v399_v34, %s1041_s12  ;;  %v482_v52 = vrot.slane %v1215_v54, 4  ;;  %v459_v58 = vsel %vm298_vm0, %v458_v13, %v1136_v0  ;;  %v473_v59 = vsel %vm298_vm0, %v433_v23, %v472_v33  ;;  %s1073_s12 = smov 124  }
  0xfa   :  { %v1224_v40 = vperm.slane %v495_v28, %v1144_v7  ;;  %v534_v25 = vrot.slane %v1112_v38, 4  ;;  %v536_v1 = vrot.slane %v1114_v39, 4  ;;  %v441_v2 = vperm.slane %v435_v47, %v1116_v45 }
  0xfb   :  { %v283_v43 = vpop.trf.xlu1  ;;  %v1232_v44 = vpop.trf.xlu0  ;;  %v496_v5 = vrot.slane %v1206_v14, 4  ;;  %v409_v23 = vsel %vm298_vm0, %v1240_v51, %v408_v26  ;;  %v403_v9 = vsel %vm298_vm0, %v402_v24, %v365_v46  ;;  %v672_v10 = vrot.slane %v1244_v56, 4 }
  0xfc   :  { %v546_v50 = vrot.slane %v1232_v44, 4  ;;  %v558_v60 = vrot.slane %v283_v43, 4  ;;  %v514_v62 = vrot.slane %v1224_v40, 4  ;;  %v1266_v11 = vperm.slane %v471_v57, %v1144_v7 }
  0xfd   :  { %v461_v12 = vsel %vm298_vm0, %v1184_v36, %v460_v21  ;;  %v660_v13 = vrot.slane %v1110_v37, 4  ;;  %v404_v6 = vrot.slane %v365_v46, 4  ;;  %v483_v14 = vsel %vm298_vm0, %v482_v52, %v441_v2 }
  0xfe   :  { %v547_v61 = vsel %vm298_vm0, %v546_v50, %v1108_v32  ;;  %v559_v16 = vsel %vm298_vm0, %v558_v60, %v1178_v55  ;;  %v515_v19 = vsel %vm298_vm0, %v514_v62, %v1266_v11  ;;  %v1279_v0 = vperm.slane %v459_v58, %v1144_v7 }
  0xff   :  { %v1259_v20 = vperm.slane %v547_v61, %v1116_v45  ;;  %771 = vrot.lane.b32.xlu1 %v409_v23, %s1046_s14  ;;  %v1282_v21 = vperm.slane %v473_v59, %v1144_v7  ;;  %v535_v36 = vsel %vm298_vm0, %v534_v25, %v1114_v39  ;;  %v560_v63 = vrot.slane %v1178_v55, 4 }
 0x100   :  { %759 = vrot.lane.b32.xlu2 %v403_v9, %s1047_s15  ;;  %v497_v29 = vsel %vm298_vm0, %v1193_v4, %v496_v5  ;;  %v537_v33 = vsel %vm298_vm0, %v1112_v38, %v536_v1  ;;  %v1298_v55 = vperm.slane %v483_v14, %v1144_v7  ;;  %v484_v26 = vrot.slane %v441_v2, 4 }
 0x101   :  { %v596_v22 = vrot.slane %v1259_v20, 4  ;;  %791 = vrot.lane.b32.xlu0 %v515_v19, %s1048_s16  ;;  %v1301_v46 = vperm.slane %v559_v16, %v1116_v45  ;;  %v508_v4 = vrot.slane %v1279_v0, 4  ;;  %v1307_v38 = vperm.slane %v497_v29, %v1144_v7  ;;  %s940_s16 = sshll.u32 %s1474_s1, 4  ;;  %s941_s16 = int_to_ptr.hbm [resolvable:$true] %s940_s16 }
 0x102   :  { %v520_v24 = vrot.slane %v1282_v21, 4  ;;  %v1311_v52 = vperm.slane %v461_v12, %v1144_v7  ;;  %v1314_v57 = vperm.slane %v535_v36, %v1116_v45  ;;  %v1317_v58 = vperm.slane %v537_v33, %v1116_v45 }
 0x103   :  { %v284_v27 = vpop.trf.xlu1  ;;  %v1288_v28 = vpop.trf.xlu0  ;;  %v597_v25 = vsel %vm298_vm0, %v1301_v46, %v596_v22  ;;  %v561_v60 = vsel %vm298_vm0, %v283_v43, %v560_v63  ;;  %v405_v62 = vsel %vm298_vm0, %v1209_v15, %v404_v6  ;;  %v509_v1 = vsel %vm298_vm0, %v1298_v55, %v508_v4 }
 0x104   :  { %v673_v34 = vsel %vm298_vm0, %v284_v27, %v672_v10  ;;  %v661_v39 = vsel %vm298_vm0, %v1288_v28, %v660_v13  ;;  %v670_v61 = vrot.slane %v284_v27, 4  ;;  %v394_v2 = vrot.slane %v1197_v8, 4 }
 0x105   :  { %v681_v47 = vperm.slane %v673_v34, %v1116_v45  ;;  %v669_v50 = vperm.slane %v661_v39, %v1116_v45  ;;  %v485_v23 = vsel %vm298_vm0, %v1215_v54, %v484_v26  ;;  %v705_v43 = vperm.slane %v1140_v3, %v1144_v7 }
 0x106   :  { %v521_v9 = vsel %vm298_vm0, %v1307_v38, %v520_v24  ;;  %v512_v15 = vrot.slane %v1311_v52, 4  ;;  %v1335_v10 = vperm.slane %v597_v25, %v1144_v7  ;;  %v582_v12 = vrot.slane %v1317_v58, 4 }
 0x107   :  { %v720_v59 = vrot.slane %v669_v50, 4  ;;  %v718_v5 = vrot.slane %v681_v47, 4  ;;  %779 = vrot.lane.b32.xlu1 %v509_v1, %s1050_s18  ;;  %v646_v13 = vrot.slane %v1120_v48, 4  ;;  %v1341_v6 = vperm.slane %v561_v60, %v1116_v45 }
 0x108   :  { %763 = vrot.lane.b32.xlu2 %v405_v62, %s1049_s17  ;;  %v573_v3 = vsel %vm298_vm0, %v1314_v57, %v572_v42  ;;  %v671_v54 = vsel %vm298_vm0, %v670_v61, %v1244_v56  ;;  %v406_v14 = vrot.slane %v1240_v51, 4  ;;  %v1351_v16 = vperm.slane %v485_v23, %v1144_v7 }
 0x109   :  { %v721_v8 = vsel %vm298_vm0, %v681_v47, %v720_v59  ;;  %803 = vrot.lane.b32.xlu0 %v521_v9, %s1051_s19  ;;  %v719_v19 = vsel %vm298_vm0, %v718_v5, %v669_v50  ;;  %v740_v36 = vrot.slane %v1161_v31, 4  ;;  %v1358_v63 = vsel %vm298_vm0, %v394_v2, %v1176_v53 }
 0x10a   :  { %v729_v48 = vperm.slane %v721_v8, %v1144_v7  ;;  %v744_v22 = vrot.slane %v705_v43, 4  ;;  %v549_v42 = vsel %vm298_vm0, %v1232_v44, %v548_v17  ;;  %v658_v51 = vrot.slane %v1288_v28, 4 }
 0x10b   :  { %v622_v56 = vrot.slane %v1335_v10, 4  ;;  %v606_v29 = vrot.slane %v1341_v6, 4  ;;  %v1368_v33 = vperm.slane %v671_v54, %v1116_v45  ;;  %v725_v34 = vperm.slane %v719_v19, %v1144_v7 }
 0x10c   :  { %v742_v27 = vrot.slane %v729_v48, 4  ;;  %v1372_v53 = vsel %vm298_vm0, %v729_v48, %v744_v22  ;;  %v407_v32 = vsel %vm298_vm0, %v406_v14, %v1181_v35  ;;  %v513_v17 = vsel %vm298_vm0, %v1351_v16, %v512_v15 }
 0x10d   :  { %v1379_v44 = vperm.slane %v573_v3, %v1144_v7  ;;  %v1385_v39 = vperm.slane %v549_v42, %v1116_v45  ;;  %v583_v26 = vsel %vm298_vm0, %v582_v12, %v1228_v41  ;;  %v1390_v35 = vsel %vm298_vm0, %v725_v34, %v740_v36 }
 0x10e   :  { %v1382_v28 = vsel %vm298_vm0, %v742_v27, %v705_v43  ;;  %v738_v47 = vrot.slane %v725_v34, 4  ;;  %v647_v50 = vsel %vm298_vm0, %v646_v13, %v1122_v49  ;;  %v659_v4 = vsel %vm298_vm0, %v658_v51, %v1110_v37 }
 0x10f   :  { %787 = vrot.lane.b32.xlu1 %v513_v17, %s1053_s21  ;;  %v623_v24 = vsel %vm298_vm0, %v622_v56, %v1379_v44  ;;  %v570_v59 = vrot.slane %v1314_v57, 4  ;;  %v706_v25 = vrot.slane %v1368_v33, 4  ;;  %v607_v60 = vsel %vm298_vm0, %v606_v29, %v1385_v39 }
 0x110   :  { %767 = vrot.lane.b32.xlu2 %v407_v32, %s1052_s20  ;;  %v1404_v61 = vsel %vm298_vm0, %v738_v47, %v1161_v31  ;;  %v518_v49 = vrot.slane %v1307_v38, 4  ;;  %v506_v37 = vrot.slane %v1298_v55, 4  ;;  %v589_v62 = vperm.slane %v583_v26, %v1144_v7 }
 0x111   :  { %815 = vrot.lane.b32.xlu0 %v623_v24, %s1054_s22  ;;  %v653_v1 = vperm.slane %v647_v50, %v1116_v45  ;;  %v594_v57 = vrot.slane %v1301_v46, 4  ;;  %v665_v2 = vperm.slane %v659_v4, %v1116_v45  ;;  %v613_v5 = vperm.slane %v607_v60, %v1144_v7 }
 0x112   :  { %v571_v23 = vsel %vm298_vm0, %v570_v59, %v1171_v18  ;;  %v519_v38 = vsel %vm298_vm0, %v518_v49, %v1282_v21  ;;  %v507_v55 = vsel %vm298_vm0, %v506_v37, %v1279_v0  ;;  %v628_v43 = vrot.slane %v589_v62, 4 }
 0x113   :  { %v707_v31 = vsel %vm298_vm0, %v706_v25, %v665_v2  ;;  %v682_v9 = vrot.slane %v653_v1, 4  ;;  %v595_v46 = vsel %vm298_vm0, %v594_v57, %v1259_v20  ;;  %v577_v18 = vperm.slane %v571_v23, %v1144_v7 }
 0x114   :  { %v629_v15 = vsel %vm298_vm0, %v613_v5, %v628_v43  ;;  %v1425_v8 = vperm.slane %v707_v31, %v1144_v7  ;;  %v641_v21 = vperm.slane %v1105_v30, %v1116_v45  ;;  %v510_v0 = vrot.slane %v1351_v16, 4 }
 0x115   :  { %v601_v12 = vperm.slane %v595_v46, %v1144_v7  ;;  %v620_v3 = vrot.slane %v577_v18, 4  ;;  %v708_v14 = vrot.slane %v665_v2, 4  ;;  %v626_v22 = vrot.slane %v613_v5, 4 }
 0x116   :  { %v683_v13 = vsel %vm298_vm0, %v682_v9, %v641_v21  ;;  %v730_v20 = vrot.slane %v1425_v8, 4  ;;  %v684_v54 = vrot.slane %v641_v21, 4  ;;  %v511_v48 = vsel %vm298_vm0, %v510_v0, %v1311_v52 }
 0x117   :  { %799 = vrot.lane.b32.xlu1 %v519_v38, %s1055_s23  ;;  %v621_v19 = vsel %vm298_vm0, %v601_v12, %v620_v3  ;;  %v689_v30 = vperm.slane %v683_v13, %v1144_v7  ;;  %v709_v36 = vsel %vm298_vm0, %v1368_v33, %v708_v14  ;;  %v584_v42 = vrot.slane %v1228_v41, 4 }
 0x118   :  { %775 = vrot.lane.b32.xlu2 %v507_v55, %s1056_s24  ;;  %v685_v45 = vsel %vm298_vm0, %v653_v1, %v684_v54  ;;  %v608_v51 = vrot.slane %v1385_v39, 4  ;;  %v516_v56 = vrot.slane %v1266_v11, 4  ;;  %v717_v27 = vperm.slane %v709_v36, %v1144_v7 }
 0x119   :  { %827 = vrot.lane.b32.xlu0 %v629_v15, %s1057_s25  ;;  %v731_v16 = vsel %vm298_vm0, %v730_v20, %v689_v30  ;;  %v693_v52 = vperm.slane %v685_v45, %v1144_v7  ;;  %v585_v29 = vsel %vm298_vm0, %v1317_v58, %v584_v42  ;;  %v627_v32 = vsel %vm298_vm0, %v626_v22, %v589_v62 }
 0x11a   :  { %v517_v34 = vsel %vm298_vm0, %v1224_v40, %v516_v56  ;;  %v609_v41 = vsel %vm298_vm0, %v1341_v6, %v608_v51  ;;  %v593_v17 = vperm.slane %v585_v29, %v1144_v7  ;;  %v618_v39 = vrot.slane %v601_v12, 4 }
 0x11b   :  { %v736_v33 = vrot.slane %v693_v52, 4  ;;  %v617_v58 = vperm.slane %v609_v41, %v1144_v7  ;;  %v734_v6 = vrot.slane %v717_v27, 4  ;;  %v624_v50 = vrot.slane %v1379_v44, 4 }
 0x11c   :  { %v632_v40 = vrot.slane %v593_v17, 4  ;;  %v619_v47 = vsel %vm298_vm0, %v618_v39, %v577_v18 }
 0x11d   :  { %v737_v11 = vsel %vm298_vm0, %v717_v27, %v736_v33  ;;  %v625_v4 = vsel %vm298_vm0, %v1335_v10, %v624_v50  ;;  %v735_v7 = vsel %vm298_vm0, %v734_v6, %v693_v52  ;;  %v630_v24 = vrot.slane %v617_v58, 4 }
 0x11e   :  { %v633_v26 = vsel %vm298_vm0, %v617_v58, %v632_v40 }
 0x11f   :  { %811 = vrot.lane.b32.xlu1 %v621_v19, %s1059_s27  ;;  %v631_v59 = vsel %vm298_vm0, %v630_v24, %v593_v17 }
 0x120   :  { %783 = vrot.lane.b32.xlu2 %v511_v48, %s1058_s26 }
 0x121   :  { %839 = vrot.lane.b32.xlu0 %v731_v16, %s1060_s28 }
 0x127   :  { %823 = vrot.lane.b32.xlu1 %v627_v32, %s1062_s30 }
 0x128   :  { %795 = vrot.lane.b32.xlu2 %v517_v34, %s1061_s29 }
 0x129   :  { %851 = vrot.lane.b32.xlu0 %v737_v11, %s1063_s2 }
 0x12f   :  { %835 = vrot.lane.b32.xlu1 %v633_v26, %s1064_s3 }
 0x130   :  { %807 = vrot.lane.b32.xlu2 %v619_v47, %s1065_s4 }
 0x131   :  { %863 = vrot.lane.b32.xlu0 %v1382_v28, %s1066_s5  ;;  %v732_v28 = vrot.slane %v689_v30, 4 }
 0x133   :  { %v733_v44 = vsel %vm298_vm0, %v1425_v8, %v732_v28  ;;  %vm900_vm0 = vcmask 523264  }
 0x137   :  { %847 = vrot.lane.b32.xlu1 %v735_v7, %s1068_s7 }
 0x138   :  { %819 = vrot.lane.b32.xlu2 %v625_v4, %s1067_s6 }
 0x13f   :  { %859 = vrot.lane.b32.xlu1 %v1390_v35, %s1070_s9 }
 0x140   :  { %831 = vrot.lane.b32.xlu2 %v631_v59, %s1069_s8 }
 0x148   :  { %843 = vrot.lane.b32.xlu2 %v733_v44, %s1071_s10 }
 0x150   :  { %855 = vrot.lane.b32.xlu2 %v1404_v61, %s1072_s11 }
 0x152   :  { %v748_v10 = vpop.permute.xlu2 %747 }
 0x153   :  { %v871_v25 = vsel %vm870_vm1, %v1358_v63, %v748_v10  ;;  %vm902_vm1 = vcmask 556032  }
 0x158   :  { %867 = vrot.lane.b32.xlu2 %v1372_v53, %s1073_s12 }
 0x15a   :  { %v760_v60 = vpop.permute.xlu2 %759 }
 0x162   :  { %v764_v49 = vpop.permute.xlu2 %763 }
 0x169   :  { %v756_v37 = vpop.permute.xlu1 %755 }
 0x16a   :  { %v768_v35 = vpop.permute.xlu2 %767 }
 0x16b   :  { %v752_v62 = vpop.permute.xlu0 %751 }
 0x16c   :  { %v873_v1 = vsel %vm872_vm2, %v871_v25, %v752_v62  ;;  %vm904_vm2 = vcmask 588800  }
 0x16d   :  { %v875_v5 = vsel %vm874_vm3, %v873_v1, %v756_v37  ;;  %vm906_vm3 = vcmask 621568  }
 0x16e   :  { %v877_v23 = vsel %vm876_vm4, %v875_v5, %v760_v60  ;;  %vm908_vm4 = vcmask 654336  }
 0x16f   :  { %v879_v38 = vsel %vm878_vm5, %v877_v23, %v764_v49  ;;  %vm910_vm5 = vcmask 687104  }
 0x170   :  { %v881_v53 = vsel %vm880_vm6, %v879_v38, %v768_v35  ;;  %vm912_vm6 = vcmask 719872  }
 0x171   :  { %v772_v57 = vpop.permute.xlu1 %771 }
 0x172   :  { %v776_v2 = vpop.permute.xlu2 %775  ;;  %v883_v55 = vsel %vm882_vm7, %v881_v53, %v772_v57  ;;  %vm914_vm7 = vcmask 752640  }
 0x173   :  { %v792_v61 = vpop.permute.xlu0 %791  ;;  %v885_v15 = vsel %vm884_vm8, %v883_v55, %v776_v2  ;;  %vm916_vm8 = vcmask 785408  }
 0x179   :  { %v780_v31 = vpop.permute.xlu1 %779 }
 0x17a   :  { %v784_v63 = vpop.permute.xlu2 %783  ;;  %v887_v18 = vsel %vm886_vm9, %v885_v15, %v780_v31  ;;  %vm918_vm9 = vcmask 818176  }
 0x17b   :  { %v804_v43 = vpop.permute.xlu0 %803  ;;  %v889_v8 = vsel %vm888_vm10, %v887_v18, %v784_v63  ;;  %vm920_vm10 = vcmask 850944  }
 0x181   :  { %v788_v9 = vpop.permute.xlu1 %787 }
 0x182   :  { %v796_v46 = vpop.permute.xlu2 %795  ;;  %v891_v21 = vsel %vm890_vm11, %v889_v8, %v788_v9  ;;  %vm922_vm11 = vcmask 883712  }
 0x183   :  { %v816_v13 = vpop.permute.xlu0 %815  ;;  %v893_v3 = vsel %vm892_vm12, %v891_v21, %v792_v61  ;;  %vm924_vm12 = vcmask 916480  }
 0x184   :  { %v895_v20 = vsel %vm894_vm13, %v893_v3, %v796_v46  ;;  %vm926_vm13 = vcmask 949248  }
 0x189   :  { %v800_v0 = vpop.permute.xlu1 %799 }
 0x18a   :  { %v808_v12 = vpop.permute.xlu2 %807  ;;  %v897_v54 = vsel %vm896_vm14, %v895_v20, %v800_v0  ;;  %vm928_vm14 = vcmask 982016  }
 0x18b   :  { %v899_v19 = vsel %vm898_vm15, %v897_v54, %v804_v43  ;;  %v828_v30 = vpop.permute.xlu0 %827  ;;  %vm930_vm15 = vcmask 1014784  }
 0x18c   :  { %v901_v45 = vsel %vm900_vm0, %v899_v19, %v808_v12 }
 0x191   :  { %v812_v14 = vpop.permute.xlu1 %811 }
 0x192   :  { %v820_v48 = vpop.permute.xlu2 %819  ;;  %v903_v16 = vsel %vm902_vm1, %v901_v45, %v812_v14 }
 0x193   :  { %v905_v36 = vsel %vm904_vm2, %v903_v16, %v816_v13  ;;  %v840_v56 = vpop.permute.xlu0 %839 }
 0x194   :  { %v907_v42 = vsel %vm906_vm3, %v905_v36, %v820_v48 }
 0x199   :  { %v824_v22 = vpop.permute.xlu1 %823 }
 0x19a   :  { %v832_v52 = vpop.permute.xlu2 %831  ;;  %v909_v51 = vsel %vm908_vm4, %v907_v42, %v824_v22 }
 0x19b   :  { %v911_v27 = vsel %vm910_vm5, %v909_v51, %v828_v30  ;;  %v852_v11 = vpop.permute.xlu0 %851 }
 0x19c   :  { %v913_v32 = vsel %vm912_vm6, %v911_v27, %v832_v52 }
 0x1a1   :  { %v836_v29 = vpop.permute.xlu1 %835 }
 0x1a2   :  { %v844_v34 = vpop.permute.xlu2 %843  ;;  %v915_v33 = vsel %vm914_vm7, %v913_v32, %v836_v29 }
 0x1a3   :  { %v917_v41 = vsel %vm916_vm8, %v915_v33, %v840_v56  ;;  %v864_v50 = vpop.permute.xlu0 %863 }
 0x1a4   :  { %v919_v39 = vsel %vm918_vm9, %v917_v41, %v844_v34 }
 0x1a9   :  { %v848_v17 = vpop.permute.xlu1 %847 }
 0x1aa   :  { %v856_v58 = vpop.permute.xlu2 %855  ;;  %v921_v40 = vsel %vm920_vm10, %v919_v39, %v848_v17 }
 0x1ab   :  { %v923_v26 = vsel %vm922_vm11, %v921_v40, %v852_v11 }
 0x1ac   :  { %v925_v47 = vsel %vm924_vm12, %v923_v26, %v856_v58 }
 0x1b1   :  { %v860_v6 = vpop.permute.xlu1 %859 }
 0x1b2   :  { %v927_v4 = vsel %vm926_vm13, %v925_v47, %v860_v6  ;;  %v868_v7 = vpop.permute.xlu2 %867 }
 0x1b3   :  { %v929_v24 = vsel %vm928_vm14, %v927_v4, %v864_v50 }
 0x1b4   :  { %v931_v59 = vsel %vm930_vm15, %v929_v24, %v868_v7 }
 0x1b5   :  { %932 = vst [vmem:[#allocation5] sm:$0xff] %v931_v59 }
 0x1b6   :  { %943 = dma.vmem_to_hbm [thread:$0]  %s939_s13, 128, %s941_s16, [#allocation4]  }
 0x1b7   :  { %1037 = dma.done.wait [#allocation4], 128  }
 0x1b8   :  { %1038 = vsyncadd [#allocation4], 4294967168 }
 0x1b9   :  { %948 = vsyncpa [#allocation3], 1 }
 0x1ba   :  { %949 = vsyncpa [#allocation4], 1 }

</bundles_post_ra>
